<compile_context>
chip_gen: v5e
topology: v5e:2x2
jax: 0.10.0
libtpu: 0.0.40
codegen_flags: <defaults>
</compile_context>

<pallas_src>
import jax
import jax.numpy as jnp
from jax import lax
from jax.experimental import pallas as pl
from jax.experimental.pallas import tpu as pltpu

EPS = 1e-5
EXPANSION = 4
_LANE = 128
_VMEM_LIMIT = 48 * 1024 * 1024  # < 64 MiB physical on v7x, > 16 MiB default on v5e


# ---------------------------------------------------------------------------
# Small host-side helpers (padding / tile selection)
# ---------------------------------------------------------------------------
def _round_up(v, m):
    return ((v + m - 1) // m) * m


def _pad_last(a, target):
    pad = target - a.shape[-1]
    if pad == 0:
        return a
    cfg = [(0, 0)] * (a.ndim - 1) + [(0, pad)]
    return jnp.pad(a, cfg)


def _pick_tile_m(m):
    # Largest M tile (multiple of 8) that still leaves >=2 steps on the M axis
    # (keeps both v7x TensorCores busy); M is zero-padded up to the tile.
    for tm in (512, 256, 128, 64, 32, 16, 8):
        if -(-m // tm) >= 2:
            return tm
    return 8


def _pick_tile_c(c):
    # c is always a multiple of 128 (channels are lane-padded).
    for t in (512, 256, 128):
        if c % t == 0:
            return t
    return 128


# ---------------------------------------------------------------------------
# Pallas kernels
# ---------------------------------------------------------------------------
def _preact_matmul_kernel(x_ref, s_ref, b_ref, w_ref, o_ref, acc_ref):
    # relu(x * scale + bias) @ w, K-tiled with a VMEM f32 accumulator.
    k = pl.program_id(2)

    @pl.when(k == 0)
    def _():
        acc_ref[...] = jnp.zeros_like(acc_ref)

    a = jnp.maximum(x_ref[...] * s_ref[...] + b_ref[...], 0.0)
    acc_ref[...] += jnp.dot(a, w_ref[...], preferred_element_type=jnp.float32)

    @pl.when(k == pl.num_programs(2) - 1)
    def _():
        o_ref[...] = acc_ref[...]


def _preact_matmul_res_kernel(x_ref, s_ref, b_ref, w_ref, r_ref, o_ref, acc_ref):
    # relu(x * scale + bias) @ w + residual (residual added at the last K step).
    k = pl.program_id(2)

    @pl.when(k == 0)
    def _():
        acc_ref[...] = jnp.zeros_like(acc_ref)

    a = jnp.maximum(x_ref[...] * s_ref[...] + b_ref[...], 0.0)
    acc_ref[...] += jnp.dot(a, w_ref[...], preferred_element_type=jnp.float32)

    @pl.when(k == pl.num_programs(2) - 1)
    def _():
        o_ref[...] = acc_ref[...] + r_ref[...]


def _make_conv3x3_kernel(stride, h, w, bn_blk, wo, wp, cp):
    """3x3/pad=1/stride conv of relu(x*scale+bias) with zero-padding applied to the
    *activated* tensor (PyTorch conv2(relu(bn2(.))) semantics).  Border taps are
    masked to exactly zero inside the kernel.

    All Ref accesses are either full loads (`ref[...]`) or contiguous static
    `pl.ds` slices; tap windows / stride subsampling are value-level static ops."""
    slice_len = stride * wo  # the padded row is wide enough for this (see wrapper)

    def kernel(x0_ref, x1_ref, x2_ref, s_ref, b_ref, w_ref, o_ref):
        ho = pl.program_id(1)
        scale = s_ref[...].reshape(1, 1, cp)
        bias = b_ref[...].reshape(1, 1, cp)
        wo_iota = lax.broadcasted_iota(jnp.int32, (1, wo, 1), 1)
        x_refs = (x0_ref, x1_ref, x2_ref)
        acc = jnp.zeros((bn_blk * wo, cp), jnp.float32)

        for ky in range(3):
            h_in = ho * stride + ky                       # padded row index
            row_ok = jnp.logical_and(h_in >= 1, h_in <= h)
            row = x_refs[ky][...].reshape(bn_blk, wp, cp)  # full-tile load
            for kx in range(3):
                win = row[:, kx:kx + slice_len, :]         # static contiguous slice
                if stride > 1:
                    # static subsample: (bn, stride*wo, cp) -> (bn, wo, cp)
                    win = win.reshape(bn_blk, wo, stride, cp)[:, :, 0, :]
                w_in = kx + stride * wo_iota               # padded col indices
                ok = jnp.logical_and(
                    jnp.logical_and(w_in >= 1, w_in <= w), row_ok)
                a = jnp.where(ok, jnp.maximum(win * scale + bias, 0.0), 0.0)
                tap = ky * 3 + kx
                wt = w_ref[pl.ds(tap * cp, cp), :]          # (cp_in, cp_out)
                acc = acc + jnp.dot(a.reshape(bn_blk * wo, cp), wt,
                                    preferred_element_type=jnp.float32)

        o_ref[...] = acc.reshape(bn_blk, 1, wo, cp)

    return kernel


# ---------------------------------------------------------------------------
# Pallas call wrappers
# ---------------------------------------------------------------------------
def preact_matmul(x, scale, bias, w, residual=None):
    """relu(x * scale + bias) @ w (+ residual).  x: (M, K), scale/bias: (1, K),
    w: (K, N), residual: (M, N) or None.  K, N are multiples of 128; M is padded
    internally to the chosen M tile."""
    m, k_dim = x.shape
    kw, n_dim = w.shape
    assert kw == k_dim and k_dim % _LANE == 0 and n_dim % _LANE == 0

    tm = _pick_tile_m(m)
    tk = _pick_tile_c(k_dim)
    tn = _pick_tile_c(n_dim)
    mp = _round_up(m, tm)
    if mp != m:
        x = jnp.pad(x, ((0, mp - m), (0, 0)))
        if residual is not None:
            residual = jnp.pad(residual, ((0, mp - m), (0, 0)))

    in_specs = [
        pl.BlockSpec((tm, tk), lambda i, j, k: (i, k)),
        pl.BlockSpec((1, tk), lambda i, j, k: (0, k)),
        pl.BlockSpec((1, tk), lambda i, j, k: (0, k)),
        pl.BlockSpec((tk, tn), lambda i, j, k: (k, j)),
    ]
    args = [x, scale, bias, w]
    if residual is None:
        kernel = _preact_matmul_kernel
    else:
        kernel = _preact_matmul_res_kernel
        in_specs.append(pl.BlockSpec((tm, tn), lambda i, j, k: (i, j)))
        args.append(residual)

    out = pl.pallas_call(
        kernel,
        out_shape=jax.ShapeDtypeStruct((mp, n_dim), jnp.float32),
        grid=(mp // tm, n_dim // tn, k_dim // tk),
        in_specs=in_specs,
        out_specs=pl.BlockSpec((tm, tn), lambda i, j, k: (i, j)),
        scratch_shapes=[pltpu.VMEM((tm, tn), jnp.float32)],
        compiler_params=pltpu.CompilerParams(
            dimension_semantics=("parallel", "parallel", "arbitrary"),
            vmem_limit_bytes=_VMEM_LIMIT),
    )(*args)
    return out[:m] if mp != m else out


def _row_map(ky, stride):
    def index_map(nb, ho):
        return (nb, ho * stride + ky, 0, 0)
    return index_map


def conv3x3_preact(h1, scale, bias, w_taps, stride):
    """conv3x3(relu(h1 * scale + bias)), pad=1, given stride, no im2col.
    h1: (N, H, W, Cp); w_taps: (3, 3, Cp, Cp) (ky, kx, cin, cout)."""
    n, h, w, cp = h1.shape
    ho = (h - 1) // stride + 1
    wo = (w - 1) // stride + 1
    # Pad the width so every tap window (start kx<=2, length stride*wo) is a static
    # contiguous slice of the padded row; the extra zero columns are masked anyway.
    wp = max(w + 2, stride * wo + 2)
    h1p = jnp.pad(h1, ((0, 0), (1, 1), (1, wp - w - 1), (0, 0)))

    bn_blk = max(d for d in (8, 4, 2, 1) if n % d == 0)    # batch block per step
    kernel = _make_conv3x3_kernel(stride, h, w, bn_blk, wo, wp, cp)
    w_flat = w_taps.reshape(9 * cp, cp)                    # tap-major, contiguous rows

    row_specs = [pl.BlockSpec((bn_blk, 1, wp, cp), _row_map(ky, stride))
                 for ky in range(3)]
    return pl.pallas_call(
        kernel,
        out_shape=jax.ShapeDtypeStruct((n, ho, wo, cp), jnp.float32),
        grid=(n // bn_blk, ho),
        in_specs=row_specs + [
            pl.BlockSpec((1, cp), lambda nb, r: (0, 0)),
            pl.BlockSpec((1, cp), lambda nb, r: (0, 0)),
            pl.BlockSpec((9 * cp, cp), lambda nb, r: (0, 0)),
        ],
        out_specs=pl.BlockSpec((bn_blk, 1, wo, cp), lambda nb, r: (nb, r, 0, 0)),
        compiler_params=pltpu.CompilerParams(
            dimension_semantics=("parallel", "parallel"),
            vmem_limit_bytes=_VMEM_LIMIT),
    )(h1p, h1p, h1p, scale, bias, w_flat)


# ---------------------------------------------------------------------------
# Plain-JAX glue (BN batch statistics, weight reshape/padding)
# ---------------------------------------------------------------------------
def bn_fold(x_real, gamma, beta, c_pad):
    """Training-mode BatchNorm2d batch stats folded to per-channel scale/bias,
    zero-padded on the lane axis to c_pad."""
    axes = tuple(range(x_real.ndim - 1))
    mean = jnp.mean(x_real, axis=axes)
    var = jnp.var(x_real, axis=axes)           # biased, like PyTorch normalization
    scale = gamma / jnp.sqrt(var + EPS)
    bias = beta - mean * scale
    return _pad_last(scale[None, :], c_pad), _pad_last(bias[None, :], c_pad)


def init_params(key, in_planes, planes, stride):
    ks = jax.random.split(key, 10)

    def conv_w(k, shape):                       # (Cout, Cin, KH, KW)
        fan_in = shape[1] * shape[2] * shape[3]
        return (jax.random.normal(k, shape, jnp.float32) /
                jnp.sqrt(jnp.float32(fan_in)))

    params = {
        "bn1_gamma": jax.random.uniform(ks[0], (in_planes,), jnp.float32, 0.5, 1.5),
        "bn1_beta": 0.1 * jax.random.normal(ks[1], (in_planes,), jnp.float32),
        "conv1_w": conv_w(ks[2], (planes, in_planes, 1, 1)),
        "bn2_gamma": jax.random.uniform(ks[3], (planes,), jnp.float32, 0.5, 1.5),
        "bn2_beta": 0.1 * jax.random.normal(ks[4], (planes,), jnp.float32),
        "conv2_w": conv_w(ks[5], (planes, planes, 3, 3)),
        "bn3_gamma": jax.random.uniform(ks[6], (planes,), jnp.float32, 0.5, 1.5),
        "bn3_beta": 0.1 * jax.random.normal(ks[7], (planes,), jnp.float32),
        "conv3_w": conv_w(ks[8], (EXPANSION * planes, planes, 1, 1)),
    }
    if stride != 1 or in_planes != EXPANSION * planes:
        params["shortcut_w"] = conv_w(ks[9], (EXPANSION * planes, in_planes, 1, 1))
    return params


def preact_bottleneck_forward(x_nchw, params, stride):
    n, cin, h, w = x_nchw.shape
    planes = params["conv1_w"].shape[0]
    cexp = params["conv3_w"].shape[0]
    cin_p = _round_up(cin, _LANE)
    pln_p = _round_up(planes, _LANE)
    ce_p = _round_up(cexp, _LANE)

    x = jnp.transpose(x_nchw, (0, 2, 3, 1)).astype(jnp.float32)       # NHWC
    s1, b1 = bn_fold(x, params["bn1_gamma"], params["bn1_beta"], cin_p)
    xp = _pad_last(x, cin_p)
    x_flat = xp.reshape(n * h * w, cin_p)

    # conv1 (1x1): relu(bn1(x)) @ W1, fused affine+relu in the matmul kernel
    w1 = jnp.pad(params["conv1_w"].reshape(planes, cin).T,
                 ((0, cin_p - cin), (0, pln_p - planes)))
    h1 = preact_matmul(x_flat, s1, b1, w1).reshape(n, h, w, pln_p)

    # shortcut branch
    if "shortcut_w" in params:
        xs = xp[:, ::stride, ::stride, :]
        ms = xs.shape[0] * xs.shape[1] * xs.shape[2]
        wsc = jnp.pad(params["shortcut_w"].reshape(cexp, cin).T,
                      ((0, cin_p - cin), (0, ce_p - cexp)))
        shortcut = preact_matmul(xs.reshape(ms, cin_p), s1, b1, wsc)
    else:
        assert cin == cexp and stride == 1 and cin_p == ce_p
        shortcut = x_flat                                              # identity

    # conv2 (3x3, stride, pad=1) fused with bn2 affine + ReLU + border mask
    s2, b2 = bn_fold(h1[..., :planes], params["bn2_gamma"], params["bn2_beta"], pln_p)
    w2 = jnp.pad(jnp.transpose(params["conv2_w"], (2, 3, 1, 0)),       # (3,3,Cin,Cout)
                 ((0, 0), (0, 0), (0, pln_p - planes), (0, pln_p - planes)))
    h2 = conv3x3_preact(h1, s2, b2, w2, stride)
    _, ho, wo, _ = h2.shape

    # conv3 (1x1) on relu(bn3(h2)), residual add fused into the kernel
    s3, b3 = bn_fold(h2[..., :planes], params["bn3_gamma"], params["bn3_beta"], pln_p)
    w3 = jnp.pad(params["conv3_w"].reshape(cexp, planes).T,
                 ((0, pln_p - planes), (0, ce_p - cexp)))
    out = preact_matmul(h2.reshape(n * ho * wo, pln_p), s3, b3, w3,
                        residual=shortcut)
    out = out[:, :cexp].reshape(n, ho, wo, cexp)
    return jnp.transpose(out, (0, 3, 1, 2))                            # back to NCHW


# ---------------------------------------------------------------------------
# Pure-JAX reference (mirrors the PyTorch module, training-mode BN)
# ---------------------------------------------------------------------------
def reference_forward(x_nchw, params, stride):
    def bn(x, gamma, beta):
        mean = jnp.mean(x, axis=(0, 2, 3), keepdims=True)
        var = jnp.var(x, axis=(0, 2, 3), keepdims=True)
        return ((x - mean) / jnp.sqrt(var + EPS) * gamma[None, :, None, None]
                + beta[None, :, None, None])

    def conv(x, w, stride=1, padding=0):
        return lax.conv_general_dilated(
            x, w, (stride, stride), [(padding, padding)] * 2,
            dimension_numbers=("NCHW", "OIHW", "NCHW"))

    out = jax.nn.relu(bn(x_nchw, params["bn1_gamma"], params["bn1_beta"]))
    if "shortcut_w" in params:
        shortcut = conv(out, params["shortcut_w"], stride=stride)
    else:
        shortcut = x_nchw
    out = conv(out, params["conv1_w"])
    out = conv(jax.nn.relu(bn(out, params["bn2_gamma"], params["bn2_beta"])),
               params["conv2_w"], stride=stride, padding=1)
    out = conv(jax.nn.relu(bn(out, params["bn3_gamma"], params["bn3_beta"])),
               params["conv3_w"])
    return out + shortcut


if __name__ == "__main__":
    key = jax.random.PRNGKey(0)
    k_x1, k_p1, k_x2, k_p2 = jax.random.split(key, 4)

    # Case 1: projection shortcut + stride 2.
    n, in_planes, h, w = 2, 16, 16, 16
    planes, stride = 8, 2
    x1 = jax.random.normal(k_x1, (n, in_planes, h, w), jnp.float32)
    params1 = init_params(k_p1, in_planes, planes, stride)
    out1 = jax.block_until_ready(preact_bottleneck_forward(x1, params1, stride))
    ref1 = jax.block_until_ready(reference_forward(x1, params1, stride))
    assert out1.shape == ref1.shape == (n, EXPANSION * planes, h // 2, w // 2)
    assert jnp.allclose(out1, ref1, rtol=1e-4, atol=1e-4), (
        float(jnp.max(jnp.abs(out1 - ref1))))

    # Case 2: identity shortcut (stride 1, in_planes == expansion * planes).
    in_planes2, planes2, stride2 = 32, 8, 1
    x2 = jax.random.normal(k_x2, (n, in_planes2, h, w), jnp.float32)
    params2 = init_params(k_p2, in_planes2, planes2, stride2)
    out2 = jax.block_until_ready(preact_bottleneck_forward(x2, params2, stride2))
    ref2 = jax.block_until_ready(reference_forward(x2, params2, stride2))
    assert out2.shape == ref2.shape == (n, EXPANSION * planes2, h, w)
    assert jnp.allclose(out2, ref2, rtol=1e-4, atol=1e-4), (
        float(jnp.max(jnp.abs(out2 - ref2))))

    print("KERNEL_OK")
</pallas_src>

<mosaic_0001>
module attributes {stable_mosaic.version = 11 : i64} {
  func.func @_preact_matmul_kernel(%arg0: i32, %arg1: i32, %arg2: i32, %arg3: memref<256x128xf32, #tpu.memory_space<vmem>>, %arg4: memref<1x128xf32, #tpu.memory_space<vmem>>, %arg5: memref<1x128xf32, #tpu.memory_space<vmem>>, %arg6: memref<128x128xf32, #tpu.memory_space<vmem>>, %arg7: memref<256x128xf32, #tpu.memory_space<vmem>>, %arg8: memref<256x128xf32, #tpu.memory_space<vmem>>) attributes {dimension_semantics = [#tpu.dimension_semantics<parallel>, #tpu.dimension_semantics<parallel>, #tpu.dimension_semantics<arbitrary>], iteration_bounds = array<i64: 2, 1, 1>, scalar_prefetch = 0 : i64, scratch_operands = 1 : i64, tpu.core_type = #tpu.core_type<tc>, window_params = [{transform_indices = @transform_0, window_bounds = array<i64: 256, 128>}, {transform_indices = @transform_1, window_bounds = array<i64: 1, 128>}, {transform_indices = @transform_2, window_bounds = array<i64: 1, 128>}, {transform_indices = @transform_3, window_bounds = array<i64: 128, 128>}, {transform_indices = @transform_4, window_bounds = array<i64: 256, 128>}]} {
    %c0_i32 = arith.constant 0 : i32
    %0 = arith.cmpi eq, %arg2, %c0_i32 : i32
    %1 = arith.extui %0 : i1 to i32
    %c0_i32_0 = arith.constant 0 : i32
    %2 = arith.cmpi ne, %1, %c0_i32_0 : i32
    scf.if %2 {
      %cst_15 = arith.constant 0.000000e+00 : f32
      %20 = vector.broadcast %cst_15 : f32 to vector<256x128xf32>
      %c0_16 = arith.constant 0 : index
      %c0_17 = arith.constant 0 : index
      %21 = vector.load %arg8[%c0_16, %c0_17] : memref<256x128xf32, #tpu.memory_space<vmem>>, vector<256x128xf32>
      tpu.vector_store %arg8[%c0_16, %c0_17], %20 {strides = array<i32>} : memref<256x128xf32, #tpu.memory_space<vmem>>, vector<256x128xf32>,
    } else {
    }
    %c0 = arith.constant 0 : index
    %c0_1 = arith.constant 0 : index
    %3 = vector.load %arg3[%c0, %c0_1] : memref<256x128xf32, #tpu.memory_space<vmem>>, vector<256x128xf32>
    %c0_2 = arith.constant 0 : index
    %c0_3 = arith.constant 0 : index
    %4 = vector.load %arg4[%c0_2, %c0_3] : memref<1x128xf32, #tpu.memory_space<vmem>>, vector<1x128xf32>
    %5 = vector.broadcast %4 : vector<1x128xf32> to vector<256x128xf32>
    %6 = arith.mulf %3, %5 : vector<256x128xf32>
    %c0_4 = arith.constant 0 : index
    %c0_5 = arith.constant 0 : index
    %7 = vector.load %arg5[%c0_4, %c0_5] : memref<1x128xf32, #tpu.memory_space<vmem>>, vector<1x128xf32>
    %8 = vector.broadcast %7 : vector<1x128xf32> to vector<256x128xf32>
    %9 = arith.addf %6, %8 : vector<256x128xf32>
    %cst = arith.constant 0.000000e+00 : f32
    %10 = vector.broadcast %cst : f32 to vector<256x128xf32>
    %11 = arith.maximumf %9, %10 : vector<256x128xf32>
    %c0_6 = arith.constant 0 : index
    %c0_7 = arith.constant 0 : index
    %12 = vector.load %arg8[%c0_6, %c0_7] : memref<256x128xf32, #tpu.memory_space<vmem>>, vector<256x128xf32>
    %c0_8 = arith.constant 0 : index
    %c0_9 = arith.constant 0 : index
    %13 = vector.load %arg6[%c0_8, %c0_9] : memref<128x128xf32, #tpu.memory_space<vmem>>, vector<128x128xf32>
    %cst_10 = arith.constant dense<0.000000e+00> : vector<256x128xf32>
    %14 = tpu.matmul %11, %13, %cst_10 {dimension_numbers = #tpu.dot_dimension_numbers<[1], [0], [0], [1], [0, 0, 1, 1], [], []>} : vector<256x128xf32>, vector<128x128xf32>, vector<256x128xf32> -> vector<256x128xf32>
    %15 = arith.addf %12, %14 : vector<256x128xf32>
    %c0_11 = arith.constant 0 : index
    %c0_12 = arith.constant 0 : index
    %16 = vector.load %arg8[%c0_11, %c0_12] : memref<256x128xf32, #tpu.memory_space<vmem>>, vector<256x128xf32>
    tpu.vector_store %arg8[%c0_11, %c0_12], %15 {strides = array<i32>} : memref<256x128xf32, #tpu.memory_space<vmem>>, vector<256x128xf32>,
    %c0_i32_13 = arith.constant 0 : i32
    %17 = arith.cmpi eq, %arg2, %c0_i32_13 : i32
    %18 = arith.extui %17 : i1 to i32
    %c0_i32_14 = arith.constant 0 : i32
    %19 = arith.cmpi ne, %18, %c0_i32_14 : i32
    scf.if %19 {
      %c0_15 = arith.constant 0 : index
      %c0_16 = arith.constant 0 : index
      %20 = vector.load %arg8[%c0_15, %c0_16] : memref<256x128xf32, #tpu.memory_space<vmem>>, vector<256x128xf32>
      %c0_17 = arith.constant 0 : index
      %c0_18 = arith.constant 0 : index
      %21 = vector.load %arg7[%c0_17, %c0_18] : memref<256x128xf32, #tpu.memory_space<vmem>>, vector<256x128xf32>
      tpu.vector_store %arg7[%c0_17, %c0_18], %20 {strides = array<i32>} : memref<256x128xf32, #tpu.memory_space<vmem>>, vector<256x128xf32>,
    } else {
    }
    return
  }
  func.func @transform_0(%arg0: i32, %arg1: i32, %arg2: i32) -> (i32, i32) {
    %c0_i32 = arith.constant 0 : i32
    return %arg0, %arg2 : i32, i32
  }
  func.func @transform_1(%arg0: i32, %arg1: i32, %arg2: i32) -> (i32, i32) {
    %c0_i32 = arith.constant 0 : i32
    %c0_i32_0 = arith.constant 0 : i32
    return %c0_i32, %arg2 : i32, i32
  }
  func.func @transform_2(%arg0: i32, %arg1: i32, %arg2: i32) -> (i32, i32) {
    %c0_i32 = arith.constant 0 : i32
    %c0_i32_0 = arith.constant 0 : i32
    return %c0_i32, %arg2 : i32, i32
  }
  func.func @transform_3(%arg0: i32, %arg1: i32, %arg2: i32) -> (i32, i32) {
    %c0_i32 = arith.constant 0 : i32
    return %arg2, %arg1 : i32, i32
  }
  func.func @transform_4(%arg0: i32, %arg1: i32, %arg2: i32) -> (i32, i32) {
    %c0_i32 = arith.constant 0 : i32
    return %arg0, %arg1 : i32, i32
  }
}

</mosaic_0001>

<bundles_post_ra>
// kernel: tpu_custom_call.1
= control target key start
LH: loop header
LB: loop body
LE: loop exit
PB: predicated region body
PF: predicated region fallthrough
CT: control target
= control target key end

     0   :  { %s1578_s0 = inlined_call_operand.hbm [shape: f32[512,128], index: 0, kind: input, shape index: {}]   ;;  %s1579_s1 = inlined_call_operand.hbm [shape: f32[1,128], index: 1, kind: input, shape index: {}]   ;;  %s1580_s2 = inlined_call_operand.vmem [shape: f32[1,128], index: 2, kind: input, shape index: {}]   ;;  %s1581_s3 = inlined_call_operand.hbm [shape: f32[128,128], index: 3, kind: input, shape index: {}]   ;;  %s1582_s4 = inlined_call_operand.hbm [shape: f32[512,128], index: 4, kind: output, shape index: {}]  }
   0x1   :  { %1583 = sst [smem:[#allocation13_spill]] %s1579_s1 }
   0x2   :  { %1584 = sst [smem:[#allocation14_spill]] %s1581_s3 }
   0x3   :  { %9 = vsyncpa [#allocation4], 0 }
   0x4   :  { %11 = vsyncpa [#allocation4 + $0x1], 0 }
   0x5   :  { %12 = vsyncpa [#allocation7], 0 }
   0x6   :  { %13 = vsyncpa [#allocation5], 0 }
   0x7   :  { %15 = vsyncpa [#allocation5 + $0x1], 0  ;;  %s1280_s15 = smov 0   ;;  %s1282_s16 = smov 0  }
   0x8   :  { %s1284_s17 = smov 0   ;;  %s1286_s18 = smov 0  }
   0x9   :  { %s1288_s19 = smov 0   ;;  %s1290_s20 = smov 0  }
   0xa LB: > { %s912_s21 = sadd.s32 4294967295, %s1247_s20   ;;  %s913_s22 = sadd.s32 4294967294, %s1247_s20   ;;  %s1247_s20 = sphi %s1290_s20, %s21_s20   ;;  %s1243_s19 = sphi %s1288_s19, %s1599_s19   ;;  %s1239_s18 = sphi %s1286_s18, %s1598_s18   ;;  %s1235_s17 = sphi %s1284_s17, %s1597_s17   ;;  %s1231_s16 = sphi %s1282_s16, %s1596_s16   ;;  %s1227_s15 = sphi %s1280_s15, %s1595_s15  }
   0xb   : > { %p56_p0 = scmp.ne.s32.totalorder %s1235_s17, %s1231_s16  ;;  %p57_p1 = scmp.eq.s32.totalorder %s1247_s20, 0 }
   0xc   : > { %p62_p2 = scmp.ne.s32.totalorder %s1231_s16, %s1227_s15  ;;  %p1318_p3 = scmp.eq.s32.totalorder %s912_s21, 0 }
   0xd   : > { %p168_p4 = scmp.eq.s32.totalorder %s912_s21, 1  ;;  %p1322_p5 = por %p57_p1, %p56_p0 }
   0xe   : > { %p174_p6 = scmp.eq.s32.totalorder %s913_s22, 1  ;;  %p1328_p7 = por %p1318_p3, %p62_p2 }
   0xf   : > { %p1332_p8 = por %p168_p4, %p56_p0  ;;  %p914_p10 = scmp.ge.s32.totalorder %s1247_s20, 1 }
  0x10   : > { %p1336_p9 = por %p174_p6, %p62_p2  ;;  %p181_p11 = scmp.lt.s32.totalorder %s1247_s20, 3 }
  0x11   : > { %s1590_s1 = sld [smem:[#allocation13_spill]]  ;;  %s1249_s7 = smov [#allocation6]  }
  0x12   : > { %p1345_p12 = pnand %p914_p10, %p181_p11  ;;  %s196_s8 = sshll.u32 %s1249_s7, 4  ;;  %s197_s8 = int_to_ptr.vmem [resolvable:$true] %s196_s8 }
  0x13   : > { %p918_p13 = scmp.ge.s32.totalorder %s1247_s20, 2  ;;  %p1011_p1 = scmp.lt.s32.totalorder %s1247_s20, 2 }
  0x14   : > { %p994_p0 = pneg %p1345_p12  ;;  %s1592_s3 = sld [smem:[#allocation14_spill]] }
  0x15   : > { %p1360_p4 = pnand %p1011_p1, %p1322_p5  ;;  %s1250_s13 = smov [#allocation8]  }
  0x16   : > { %p995_p2 = pnand %p994_p0, %p1318_p3  ;;  %s217_s14 = sshll.u32 %s1250_s13, 4  ;;  %s218_s14 = int_to_ptr.vmem [resolvable:$true] %s217_s14 }
  0x17   : > { %s194_s5 = sshll.u32 %s1590_s1, 4  ;;  %s1251_s21 = smov 128   ;;  %s195_s5 = int_to_ptr.hbm [resolvable:$true] %s194_s5 }
  0x18   : > { %997 = dma.hbm_to_vmem [thread:$0]  (!%p995_p2), %s195_s5, 16, %s197_s8, [#allocation7]  }
  0x19   : > { %s1252_s22 = smov 8   ;;  %s231_s29 = sand.u32 1, %s1235_s17  }
  0x1a   : > { %s215_s11 = sshll.u32 %s1592_s3, 4  ;;  %s40_s30 = sadd.s32 1, %s1243_s19  ;;  %s216_s11 = int_to_ptr.hbm [resolvable:$true] %s215_s11 }
  0x1b   : > { %1000 = dma.hbm_to_vmem [thread:$0]  (!%p995_p2), %s216_s11, 2048, %s218_s14, [#allocation7], %s1251_s21, %s1251_s21, %s1252_s22  }
  0x1c   : > { %s919_s7 = sshll.u32 %s231_s29, 8  ;;  %p42_p6 = scmp.ge.s32.totalorder %s40_s30, 2 }
  0x1d   : > { %s932_s25 = sshll.u32 %s1243_s19, 8  ;;  %s235_s9 = scalar_lea.vmem [#allocation3], %s919_s7 }
  0x1e   : > { %s244_s10 = sshll.u32 %s235_s9, 4  ;;  %s1601_s30 = smov (%p42_p6, %s40_s30), 0  ;;  %s245_s10 = int_to_ptr.vmem [resolvable:$true] %s244_s10 }
  0x1f   : > { %s241_s5 = scalar_lea.hbm %s1578_s0, %s932_s25  ;;  %s44_s8 = ssub.s32 %s1243_s19, %s1601_s30 }
  0x20   : > { %s242_s11 = sshll.u32 %s241_s5, 4  ;;  %p47_p5 = scmp.eq.s32.totalorder %s44_s8, 0  ;;  %s243_s11 = int_to_ptr.hbm [resolvable:$true] %s242_s11 }
  0x21   : > { %s232_s14 = scalar_lea.sflag [#allocation4], %s231_s29  ;;  %s1594_s1 = sadd.s32 1, %s1235_s17 }
  0x22   : > { %1004 = dma.hbm_to_vmem [thread:$0]  (!%p1360_p4), %s243_s11, 4096, %s245_s10, %s232_s14, %s1251_s21, %s1251_s21, %s1252_s22  }
  0x23   : > { %s1379_s3 = scalar_select %p47_p5, %s1235_s17, %s1594_s1  }
  0x24   : > { %256 = sbr.rel (%p1345_p12) target bundleno = 269 (0x10d), region = 36  ;;  %s1384_s7 = sand.u32 (!%p1345_p12), 1, %s1231_s16  }
  0x25   : > { %s923_s23 = sshll.u32 (!%p1345_p12), %s1384_s7, 8  ;;  %s259_s25 = scalar_lea.sflag (!%p1345_p12), [#allocation4], %s1384_s7 }
  0x26   : > { %s1390_s9 = scalar_lea.vmem (!%p1345_p12), [#allocation3], %s923_s23 }
  0x29   : > { %1214 = dma.done.wait (%p1328_p7), %s259_s25, 4096  }
  0x2a   : > { %1216 = vsyncadd (%p1328_p7), %s259_s25, 4294963200 }
  0x2b   : > { %1218 = dma.done.wait (%p1318_p3), [#allocation7], 2064  }
  0x2c   : > { %1220 = vsyncadd (%p1318_p3), [#allocation7], 4294965232  ;;  %v526_v0 = vld [vmem:[#allocation8 + $0x78] sm:$0xff]  ;;  %v525_v1 = vld [vmem:[#allocation8 + $0x70] sm:$0xff]  ;;  %s1505_s26 = scalar_lea.vmem [#allocation9], %s923_s23  ;;  %s933_s6 = sshll.u32 %s1239_s18, 8 }
  0x2d   : > { %935 = vmatpush.msra.mxu2 %v526_v0  ;;  %936 = vmatpush.msra.mxu3 %v526_v0  ;;  %v524_v2 = vld [vmem:[#allocation8 + $0x68] sm:$0xff]  ;;  %v523_v3 = vld [vmem:[#allocation8 + $0x60] sm:$0xff]  ;;  %v522_v4 = vld [vmem:[#allocation8 + $0x58] sm:$0xff]  ;;  %s784_s22 = scalar_lea.hbm %s1582_s4, %s933_s6  ;;  %s785_s29 = sshll.u32 %s1505_s26, 4  ;;  %s786_s29 = int_to_ptr.vmem [resolvable:$true] %s785_s29 }
  0x2e   : > { %527 = vmatpush.msra.mxu0 %v526_v0  ;;  %934 = vmatpush.msra.mxu1 %v526_v0  ;;  %v521_v5 = vld [vmem:[#allocation8 + $0x50] sm:$0xff]  ;;  %v520_v6 = vld [vmem:[#allocation8 + $0x48] sm:$0xff]  ;;  %v519_v7 = vld [vmem:[#allocation8 + $0x40] sm:$0xff]  ;;  %s787_s10 = sshll.u32 %s784_s22, 4  ;;  %s772_s18 = scalar_lea.sflag [#allocation5], %s1384_s7  ;;  %s788_s10 = int_to_ptr.hbm [resolvable:$true] %s787_s10 }
  0x2f   : > { %938 = vmatpush.msra.mxu2 %v525_v1  ;;  %939 = vmatpush.msra.mxu3 %v525_v1  ;;  %v518_v8 = vld [vmem:[#allocation8 + $0x38] sm:$0xff]  ;;  %v517_v9 = vld [vmem:[#allocation8 + $0x30] sm:$0xff]  ;;  %v516_v13 = vld [vmem:[#allocation8 + $0x28] sm:$0xff]  ;;  %s1175_s13 = sshra.s32 %s788_s10, 4  ;;  %s1181_s14 = scalar_lea.hbm %s1582_s4, 512  ;;  %s1176_s13 = int_to_ptr.hbm [resolvable:$true] %s1175_s13 }
  0x30   : > { %528 = vmatpush.msra.mxu0 %v525_v1  ;;  %937 = vmatpush.msra.mxu1 %v525_v1  ;;  %v1400_v10 = vld [vmem:[#allocation6] ss:$0 sm:$0xff]  ;;  %v515_v16 = vld [vmem:[#allocation8 + $0x20] sm:$0xff]  ;;  %v513_v23 = vld [vmem:[#allocation8 + $0x10] sm:$0xff]  ;;  %s1177_s5 = scalar_lea.hbm %s1176_s13, 256  ;;  %p1182_p11 = scmp.lt.s32.totalorder %s1176_s13, %s1582_s4 }
  0x31   : > { %941 = vmatpush.msra.mxu2 %v524_v2  ;;  %942 = vmatpush.msra.mxu3 %v524_v2  ;;  %v359_v11 = vld [vmem:[%s1390_s9 + $0x80] sm:$0xff]  ;;  %v360_v26 = vld [vmem:[%s1390_s9 + $0x88] sm:$0xff]  ;;  %v361_v44 = vld [vmem:[%s1390_s9 + $0x90] sm:$0xff]  ;;  %p1178_p3 = scmp.ne.s32.totalorder %s1176_s13, %s1177_s5  ;;  %p1183_p12 = scmp.lt.s32.totalorder %s1181_s14, %s1177_s5 }
  0x32   : > { %529 = vmatpush.msra.mxu0 %v524_v2  ;;  %940 = vmatpush.msra.mxu1 %v524_v2  ;;  %v367_v12 = vld [vmem:[%s1390_s9 + $0xc0] sm:$0xff]  ;;  %v395_v17 = vmul.f32 %v1400_v10, %v359_v11  ;;  %v368_v27 = vld [vmem:[%s1390_s9 + $0xc8] sm:$0xff]  ;;  %v396_v36 = vmul.f32 %v1400_v10, %v360_v26  ;;  %v369_v45 = vld [vmem:[%s1390_s9 + $0xd0] sm:$0xff]  ;;  %v397_v52 = vmul.f32 %v1400_v10, %v361_v44 }
  0x33   : > { %944 = vmatpush.msra.mxu2 %v523_v3  ;;  %945 = vmatpush.msra.mxu3 %v523_v3  ;;  %v343_v14 = vld [vmem:[%s1390_s9] sm:$0xff]  ;;  %v403_v19 = vmul.f32 %v1400_v10, %v367_v12  ;;  %v512_v28 = vld [vmem:[#allocation8 + $0x8] sm:$0xff]  ;;  %v404_v37 = vmul.f32 %v1400_v10, %v368_v27  ;;  %v405_v53 = vmul.f32 %v1400_v10, %v369_v45  ;;  %v362_v60 = vld [vmem:[%s1390_s9 + $0x98] sm:$0xff]  ;;  %p1179_p7 = pnand %p1178_p3, %p1332_p8  ;;  %p1184_p0 = por %p1183_p12, %p1182_p11 }
  0x34   : > { %530 = vmatpush.msra.mxu0 %v523_v3  ;;  %943 = vmatpush.msra.mxu1 %v523_v3  ;;  %v351_v15 = vld [vmem:[%s1390_s9 + $0x40] sm:$0xff]  ;;  %v379_v21 = vmul.f32 %v1400_v10, %v343_v14  ;;  %v344_v31 = vld [vmem:[%s1390_s9 + $0x8] sm:$0xff]  ;;  %v345_v48 = vld [vmem:[%s1390_s9 + $0x10] sm:$0xff] }
  0x35   : > { %947 = vmatpush.msra.mxu2 %v522_v4  ;;  %948 = vmatpush.msra.mxu3 %v522_v4  ;;  %v1410_v18 = vld [vmem:[%s1580_s2] ss:$0 sm:$0xff]  ;;  %v387_v22 = vmul.f32 %v1400_v10, %v351_v15  ;;  %v352_v32 = vld [vmem:[%s1390_s9 + $0x48] sm:$0xff]  ;;  %v380_v40 = vmul.f32 %v1400_v10, %v344_v31  ;;  %v353_v49 = vld [vmem:[%s1390_s9 + $0x50] sm:$0xff]  ;;  %v381_v56 = vmul.f32 %v1400_v10, %v345_v48  ;;  %p1180_p10 = pneg %p1179_p7 }
  0x36   : > { %531 = vmatpush.msra.mxu0 %v522_v4  ;;  %946 = vmatpush.msra.mxu1 %v522_v4  ;;  %v514_v20 = vld [vmem:[#allocation8 + $0x18] sm:$0xff]  ;;  %v431_v24 = vadd.f32 %v1410_v18, %v395_v17  ;;  %v439_v25 = vadd.f32 %v1410_v18, %v403_v19  ;;  %v415_v29 = vadd.f32 %v1410_v18, %v379_v21  ;;  %v511_v33 = vld [vmem:[#allocation8] sm:$0xff] }
  0x37   : > { %950 = vmatpush.msra.mxu2 %v521_v5  ;;  %951 = vmatpush.msra.mxu3 %v521_v5  ;;  %v423_v30 = vadd.f32 %v1410_v18, %v387_v22  ;;  %v388_v41 = vmul.f32 %v1400_v10, %v352_v32  ;;  %v432_v42 = vadd.f32 %v1410_v18, %v396_v36  ;;  %v370_v61 = vld [vmem:[%s1390_s9 + $0xd8] sm:$0xff]  ;;  %v371_v14 = vld [vmem:[%s1390_s9 + $0xe0] sm:$0xff]  ;;  %v372_v31 = vld [vmem:[%s1390_s9 + $0xe8] sm:$0xff]  ;;  %p1185_p1 = pnand %p1184_p0, %p1180_p10 }
  0x38   : > { %532 = vmatpush.msra.mxu0 %v521_v5  ;;  %949 = vmatpush.msra.mxu1 %v521_v5  ;;  %v463_v34 = vmax.f32 %v431_v24, 0.0  ;;  %v471_v35 = vmax.f32 %v439_v25, 0.0  ;;  %v447_v38 = vmax.f32 %v415_v29, 0.0  ;;  %v440_v43 = vadd.f32 %v1410_v18, %v404_v37  ;;  %v346_v0 = vld [vmem:[%s1390_s9 + $0x18] sm:$0xff]  ;;  %v347_v17 = vld [vmem:[%s1390_s9 + $0x20] sm:$0xff] }
  0x39   : > { %953 = vmatpush.msra.mxu2 %v520_v6  ;;  %954 = vmatpush.msra.mxu3 %v520_v6  ;;  %v455_v39 = vmax.f32 %v423_v30, 0.0  ;;  %v416_v46 = vadd.f32 %v1410_v18, %v380_v40  ;;  %v424_v47 = vadd.f32 %v1410_v18, %v388_v41  ;;  %v464_v50 = vmax.f32 %v432_v42, 0.0  ;;  %v354_v1 = vld [vmem:[%s1390_s9 + $0x58] sm:$0xff]  ;;  %v355_v19 = vld [vmem:[%s1390_s9 + $0x60] sm:$0xff]  ;;  %v364_v30 = vld [vmem:[%s1390_s9 + $0xa8] sm:$0xff] }
  0x3a   : > { %533 = vmatpush.msra.mxu0 %v520_v6  ;;  %952 = vmatpush.msra.mxu1 %v520_v6  ;;  %v472_v51 = vmax.f32 %v440_v43, 0.0  ;;  %v389_v57 = vmul.f32 %v1400_v10, %v353_v49  ;;  %v433_v58 = vadd.f32 %v1410_v18, %v397_v52  ;;  %v441_v59 = vadd.f32 %v1410_v18, %v405_v53 }
  0x3b   : > { %956 = vmatpush.msra.mxu2 %v519_v7  ;;  %957 = vmatpush.msra.mxu3 %v519_v7  ;;  %v448_v54 = vmax.f32 %v416_v46, 0.0  ;;  %v456_v55 = vmax.f32 %v424_v47, 0.0  ;;  %v417_v62 = vadd.f32 %v1410_v18, %v381_v56  ;;  %v398_v4 = vmul.f32 %v1400_v10, %v362_v60  ;;  %v365_v46 = vld [vmem:[%s1390_s9 + $0xb0] sm:$0xff] }
  0x3c   : > { %534 = vmatpush.msra.mxu0 %v519_v7  ;;  %955 = vmatpush.msra.mxu1 %v519_v7  ;;  %v425_v63 = vadd.f32 %v1410_v18, %v389_v57  ;;  %v465_v2 = vmax.f32 %v433_v58, 0.0  ;;  %v473_v3 = vmax.f32 %v441_v59, 0.0  ;;  %v406_v5 = vmul.f32 %v1400_v10, %v370_v61  ;;  %v373_v47 = vld [vmem:[%s1390_s9 + $0xf0] sm:$0xff] }
  0x3d   : > { %959 = vmatpush.msra.mxu2 %v518_v8  ;;  %960 = vmatpush.msra.mxu3 %v518_v8  ;;  %v449_v6 = vmax.f32 %v417_v62, 0.0  ;;  %v434_v11 = vadd.f32 %v1410_v18, %v398_v4  ;;  %v383_v26 = vmul.f32 %v1400_v10, %v347_v17  ;;  %v391_v27 = vmul.f32 %v1400_v10, %v355_v19  ;;  %v366_v62 = vld [vmem:[%s1390_s9 + $0xb8] sm:$0xff] }
  0x3e   : > { %535 = vmatpush.msra.mxu0 %v518_v8  ;;  %958 = vmatpush.msra.mxu1 %v518_v8  ;;  %v457_v7 = vmax.f32 %v425_v63, 0.0  ;;  %v382_v8 = vmul.f32 %v1400_v10, %v346_v0  ;;  %v442_v12 = vadd.f32 %v1410_v18, %v406_v5  ;;  %v374_v63 = vld [vmem:[%s1390_s9 + $0xf8] sm:$0xff] }
  0x3f   : > { %962 = vmatpush.msra.mxu2 %v517_v9  ;;  %963 = vmatpush.msra.mxu3 %v517_v9  ;;  %v419_v32 = vadd.f32 %v1410_v18, %v383_v26 }
  0x40   : > { %536 = vmatpush.msra.mxu0 %v517_v9  ;;  %961 = vmatpush.msra.mxu1 %v517_v9  ;;  %v390_v9 = vmul.f32 %v1400_v10, %v354_v1  ;;  %v418_v15 = vadd.f32 %v1410_v18, %v382_v8  ;;  %v474_v21 = vmax.f32 %v442_v12, 0.0 }
  0x41   : > { %965 = vmatpush.msra.mxu2 %v516_v13  ;;  %966 = vmatpush.msra.mxu3 %v516_v13  ;;  %v451_v40 = vmax.f32 %v419_v32, 0.0 }
  0x42   : > { %537 = vmatpush.msra.mxu0 %v516_v13  ;;  %964 = vmatpush.msra.mxu1 %v516_v13  ;;  %v363_v13 = vld [vmem:[%s1390_s9 + $0xa0] sm:$0xff]  ;;  %v450_v24 = vmax.f32 %v418_v15, 0.0 }
  0x43   : > { %968 = vmatpush.msra.mxu2 %v515_v16  ;;  %969 = vmatpush.msra.mxu3 %v515_v16  ;;  %v399_v22 = vmul.f32 %v1400_v10, %v363_v13 }
  0x44   : > { %538 = vmatpush.msra.mxu0 %v515_v16  ;;  %967 = vmatpush.msra.mxu1 %v515_v16  ;;  %v426_v16 = vadd.f32 %v1410_v18, %v390_v9 }
  0x45   : > { %971 = vmatpush.msra.mxu2 %v514_v20  ;;  %972 = vmatpush.msra.mxu3 %v514_v20 }
  0x46   : > { %539 = vmatpush.msra.mxu0 %v514_v20  ;;  %970 = vmatpush.msra.mxu1 %v514_v20  ;;  %v466_v20 = vmax.f32 %v434_v11, 0.0  ;;  %v458_v25 = vmax.f32 %v426_v16, 0.0 }
  0x47   : > { %974 = vmatpush.msra.mxu2 %v513_v23  ;;  %975 = vmatpush.msra.mxu3 %v513_v23 }
  0x48   : > { %540 = vmatpush.msra.mxu0 %v513_v23  ;;  %973 = vmatpush.msra.mxu1 %v513_v23  ;;  %v407_v23 = vmul.f32 %v1400_v10, %v371_v14 }
  0x49   : > { %977 = vmatpush.msra.mxu2 %v512_v28  ;;  %978 = vmatpush.msra.mxu3 %v512_v28 }
  0x4a   : > { %541 = vmatpush.msra.mxu0 %v512_v28  ;;  %976 = vmatpush.msra.mxu1 %v512_v28  ;;  %v435_v28 = vadd.f32 %v1410_v18, %v399_v22  ;;  %v443_v29 = vadd.f32 %v1410_v18, %v407_v23 }
  0x4b   : > { %980 = vmatpush.msra.mxu2 %v511_v33  ;;  %981 = vmatpush.msra.mxu3 %v511_v33 }
  0x4c   : > { %591 = vmatmul.f32.vlgmr.msra.gmra.mxu2 %v463_v34  ;;  %615 = vmatmul.f32.vlgmr.msra.gmra.mxu3 %v471_v35  ;;  %v348_v34 = vld [vmem:[%s1390_s9 + $0x28] sm:$0xff]  ;;  %v467_v36 = vmax.f32 %v435_v28, 0.0  ;;  %v475_v37 = vmax.f32 %v443_v29, 0.0 }
  0x4d   : > { %542 = vmatpush.msra.mxu0 %v511_v33  ;;  %979 = vmatpush.msra.mxu1 %v511_v33  ;;  %v427_v33 = vadd.f32 %v1410_v18, %v391_v27  ;;  %v356_v35 = vld [vmem:[%s1390_s9 + $0x68] sm:$0xff]  ;;  %v384_v42 = vmul.f32 %v1400_v10, %v348_v34 }
  0x4e   : > { %543 = vmatmul.f32.vlgmr.msra.gmra.mxu0 %v447_v38  ;;  %567 = vmatmul.f32.vlgmr.msra.gmra.mxu1 %v455_v39  ;;  %v400_v38 = vmul.f32 %v1400_v10, %v364_v30  ;;  %v408_v39 = vmul.f32 %v1400_v10, %v372_v31  ;;  %v392_v43 = vmul.f32 %v1400_v10, %v356_v35 }
  0x4f   : > { %v459_v41 = vmax.f32 %v427_v33, 0.0  ;;  %v420_v48 = vadd.f32 %v1410_v18, %v384_v42 }
  0x50   : > { %v436_v44 = vadd.f32 %v1410_v18, %v400_v38  ;;  %v444_v45 = vadd.f32 %v1410_v18, %v408_v39  ;;  %v428_v49 = vadd.f32 %v1410_v18, %v392_v43 }
  0x51   : > { %v452_v56 = vmax.f32 %v420_v48, 0.0 }
  0x52   : > { %v468_v52 = vmax.f32 %v436_v44, 0.0  ;;  %v476_v53 = vmax.f32 %v444_v45, 0.0  ;;  %v460_v57 = vmax.f32 %v428_v49, 0.0 }
  0x54   : > { %594 = vmatmul.f32.gmra.mxu2 %v464_v50  ;;  %618 = vmatmul.f32.gmra.mxu3 %v472_v51  ;;  %v349_v50 = vld [vmem:[%s1390_s9 + $0x30] sm:$0xff] }
  0x55   : > { %v357_v51 = vld [vmem:[%s1390_s9 + $0x70] sm:$0xff]  ;;  %v385_v58 = vmul.f32 %v1400_v10, %v349_v50 }
  0x56   : > { %546 = vmatmul.f32.gmra.mxu0 %v448_v54  ;;  %570 = vmatmul.f32.gmra.mxu1 %v456_v55  ;;  %v401_v54 = vmul.f32 %v1400_v10, %v365_v46  ;;  %v409_v55 = vmul.f32 %v1400_v10, %v373_v47  ;;  %v393_v59 = vmul.f32 %v1400_v10, %v357_v51 }
  0x57   : > { %v421_v0 = vadd.f32 %v1410_v18, %v385_v58 }
  0x58   : > { %v437_v60 = vadd.f32 %v1410_v18, %v401_v54  ;;  %v445_v61 = vadd.f32 %v1410_v18, %v409_v55  ;;  %v429_v1 = vadd.f32 %v1410_v18, %v393_v59 }
  0x59   : > { %v453_v8 = vmax.f32 %v421_v0, 0.0 }
  0x5a   : > { %v469_v4 = vmax.f32 %v437_v60, 0.0  ;;  %v477_v5 = vmax.f32 %v445_v61, 0.0  ;;  %v461_v9 = vmax.f32 %v429_v1, 0.0 }
  0x5c   : > { %597 = vmatmul.f32.gmra.mxu2 %v465_v2  ;;  %621 = vmatmul.f32.gmra.mxu3 %v473_v3  ;;  %v350_v2 = vld [vmem:[%s1390_s9 + $0x38] sm:$0xff] }
  0x5d   : > { %v358_v3 = vld [vmem:[%s1390_s9 + $0x78] sm:$0xff]  ;;  %v386_v11 = vmul.f32 %v1400_v10, %v350_v2 }
  0x5e   : > { %549 = vmatmul.f32.gmra.mxu0 %v449_v6  ;;  %573 = vmatmul.f32.gmra.mxu1 %v457_v7  ;;  %v402_v6 = vmul.f32 %v1400_v10, %v366_v62  ;;  %v410_v7 = vmul.f32 %v1400_v10, %v374_v63  ;;  %v394_v12 = vmul.f32 %v1400_v10, %v358_v3 }
  0x5f   : > { %v422_v15 = vadd.f32 %v1410_v18, %v386_v11 }
  0x60   : > { %v438_v13 = vadd.f32 %v1410_v18, %v402_v6  ;;  %v446_v14 = vadd.f32 %v1410_v18, %v410_v7  ;;  %v430_v16 = vadd.f32 %v1410_v18, %v394_v12 }
  0x62   : > { %v470_v17 = vmax.f32 %v438_v13, 0.0  ;;  %v478_v19 = vmax.f32 %v446_v14, 0.0 }
  0x64   : > { %600 = vmatmul.f32.gmra.mxu2 %v466_v20  ;;  %624 = vmatmul.f32.gmra.mxu3 %v474_v21  ;;  %v454_v20 = vmax.f32 %v422_v15, 0.0  ;;  %v462_v21 = vmax.f32 %v430_v16, 0.0 }
  0x66   : > { %552 = vmatmul.f32.gmra.mxu0 %v450_v24  ;;  %576 = vmatmul.f32.gmra.mxu1 %v458_v25 }
  0x6c   : > { %603 = vmatmul.f32.gmra.mxu2 %v467_v36  ;;  %627 = vmatmul.f32.gmra.mxu3 %v475_v37 }
  0x6e   : > { %555 = vmatmul.f32.gmra.mxu0 %v451_v40  ;;  %579 = vmatmul.f32.gmra.mxu1 %v459_v41 }
  0x74   : > { %606 = vmatmul.f32.gmra.mxu2 %v468_v52  ;;  %630 = vmatmul.f32.gmra.mxu3 %v476_v53 }
  0x76   : > { %558 = vmatmul.f32.gmra.mxu0 %v452_v56  ;;  %582 = vmatmul.f32.gmra.mxu1 %v460_v57 }
  0x7c   : > { %609 = vmatmul.f32.gmra.mxu2 %v469_v4  ;;  %633 = vmatmul.f32.gmra.mxu3 %v477_v5 }
  0x7e   : > { %561 = vmatmul.f32.gmra.mxu0 %v453_v8  ;;  %585 = vmatmul.f32.gmra.mxu1 %v461_v9 }
  0x84   : > { %612 = vmatmul.f32.gmra.mxu2 %v470_v17  ;;  %636 = vmatmul.f32.gmra.mxu3 %v478_v19 }
  0x86   : > { %564 = vmatmul.f32.gmra.mxu0 %v454_v20  ;;  %588 = vmatmul.f32.gmra.mxu1 %v462_v21 }
  0xcb   : > { %v544_v10 = vpop.f32.mrf.mxu0  ;;  %v568_v22 = vpop.f32.mrf.mxu1 }
  0xcc   : > { %739 = vst [vmem:[%s1505_s26] sm:$0xff] %v544_v10 }
  0xcd   : > { %747 = vst [vmem:[%s1505_s26 + $0x40] sm:$0xff] %v568_v22 }
  0xcf   : > { %v592_v18 = vpop.f32.mrf.mxu2  ;;  %v616_v23 = vpop.f32.mrf.mxu3 }
  0xd0   : > { %755 = vst [vmem:[%s1505_s26 + $0x80] sm:$0xff] %v592_v18 }
  0xd1   : > { %763 = vst [vmem:[%s1505_s26 + $0xc0] sm:$0xff] %v616_v23 }
  0xd3   : > { %v547_v24 = vpop.f32.mrf.mxu0  ;;  %v571_v25 = vpop.f32.mrf.mxu1 }
  0xd4   : > { %740 = vst [vmem:[%s1505_s26 + $0x8] sm:$0xff] %v547_v24 }
  0xd5   : > { %748 = vst [vmem:[%s1505_s26 + $0x48] sm:$0xff] %v571_v25 }
  0xd7   : > { %v595_v26 = vpop.f32.mrf.mxu2  ;;  %v619_v27 = vpop.f32.mrf.mxu3 }
  0xd8   : > { %756 = vst [vmem:[%s1505_s26 + $0x88] sm:$0xff] %v595_v26 }
  0xd9   : > { %764 = vst [vmem:[%s1505_s26 + $0xc8] sm:$0xff] %v619_v27 }
  0xdb   : > { %v550_v28 = vpop.f32.mrf.mxu0  ;;  %v574_v29 = vpop.f32.mrf.mxu1 }
  0xdc   : > { %741 = vst [vmem:[%s1505_s26 + $0x10] sm:$0xff] %v550_v28 }
  0xdd   : > { %749 = vst [vmem:[%s1505_s26 + $0x50] sm:$0xff] %v574_v29 }
  0xdf   : > { %v598_v30 = vpop.f32.mrf.mxu2  ;;  %v622_v31 = vpop.f32.mrf.mxu3 }
  0xe0   : > { %757 = vst [vmem:[%s1505_s26 + $0x90] sm:$0xff] %v598_v30 }
  0xe1   : > { %765 = vst [vmem:[%s1505_s26 + $0xd0] sm:$0xff] %v622_v31 }
  0xe3   : > { %v553_v32 = vpop.f32.mrf.mxu0  ;;  %v577_v33 = vpop.f32.mrf.mxu1 }
  0xe4   : > { %742 = vst [vmem:[%s1505_s26 + $0x18] sm:$0xff] %v553_v32 }
  0xe5   : > { %750 = vst [vmem:[%s1505_s26 + $0x58] sm:$0xff] %v577_v33 }
  0xe7   : > { %v601_v34 = vpop.f32.mrf.mxu2  ;;  %v625_v35 = vpop.f32.mrf.mxu3 }
  0xe8   : > { %758 = vst [vmem:[%s1505_s26 + $0x98] sm:$0xff] %v601_v34 }
  0xe9   : > { %766 = vst [vmem:[%s1505_s26 + $0xd8] sm:$0xff] %v625_v35 }
  0xeb   : > { %v556_v36 = vpop.f32.mrf.mxu0  ;;  %v580_v37 = vpop.f32.mrf.mxu1 }
  0xec   : > { %743 = vst [vmem:[%s1505_s26 + $0x20] sm:$0xff] %v556_v36 }
  0xed   : > { %751 = vst [vmem:[%s1505_s26 + $0x60] sm:$0xff] %v580_v37 }
  0xef   : > { %v604_v38 = vpop.f32.mrf.mxu2  ;;  %v628_v39 = vpop.f32.mrf.mxu3 }
  0xf0   : > { %759 = vst [vmem:[%s1505_s26 + $0xa0] sm:$0xff] %v604_v38 }
  0xf1   : > { %767 = vst [vmem:[%s1505_s26 + $0xe0] sm:$0xff] %v628_v39 }
  0xf3   : > { %v559_v40 = vpop.f32.mrf.mxu0  ;;  %v583_v41 = vpop.f32.mrf.mxu1 }
  0xf4   : > { %744 = vst [vmem:[%s1505_s26 + $0x28] sm:$0xff] %v559_v40 }
  0xf5   : > { %752 = vst [vmem:[%s1505_s26 + $0x68] sm:$0xff] %v583_v41 }
  0xf7   : > { %v607_v42 = vpop.f32.mrf.mxu2  ;;  %v631_v43 = vpop.f32.mrf.mxu3 }
  0xf8   : > { %760 = vst [vmem:[%s1505_s26 + $0xa8] sm:$0xff] %v607_v42 }
  0xf9   : > { %768 = vst [vmem:[%s1505_s26 + $0xe8] sm:$0xff] %v631_v43 }
  0xfb   : > { %v562_v44 = vpop.f32.mrf.mxu0  ;;  %v586_v45 = vpop.f32.mrf.mxu1 }
  0xfc   : > { %745 = vst [vmem:[%s1505_s26 + $0x30] sm:$0xff] %v562_v44 }
  0xfd   : > { %753 = vst [vmem:[%s1505_s26 + $0x70] sm:$0xff] %v586_v45 }
  0xff   : > { %v610_v46 = vpop.f32.mrf.mxu2  ;;  %v634_v47 = vpop.f32.mrf.mxu3 }
 0x100   : > { %761 = vst [vmem:[%s1505_s26 + $0xb0] sm:$0xff] %v610_v46 }
 0x101   : > { %769 = vst [vmem:[%s1505_s26 + $0xf0] sm:$0xff] %v634_v47 }
 0x103   : > { %v565_v48 = vpop.f32.mrf.mxu0  ;;  %v589_v49 = vpop.f32.mrf.mxu1 }
 0x104   : > { %746 = vst [vmem:[%s1505_s26 + $0x38] sm:$0xff] %v565_v48 }
 0x105   : > { %754 = vst [vmem:[%s1505_s26 + $0x78] sm:$0xff] %v589_v49 }
 0x107   : > { %v613_v50 = vpop.f32.mrf.mxu2  ;;  %v637_v51 = vpop.f32.mrf.mxu3 }
 0x108   : > { %762 = vst [vmem:[%s1505_s26 + $0xb8] sm:$0xff] %v613_v50 }
 0x109   : > { %770 = vst [vmem:[%s1505_s26 + $0xf8] sm:$0xff] %v637_v51 }
 0x10a   : > { %1188 = shalt.err (!%p1185_p1)
}
 0x10b   : > { %s1253_s7 = smov 128   ;;  %s1254_s9 = smov 8  }
 0x10c   : > { %992 = dma.vmem_to_hbm [thread:$0]  (%p1332_p8), %s786_s29, 4096, %s788_s10, %s772_s18, %s1253_s7, %s1253_s7, %s1254_s9  }
 0x10d PF: > { %s802_s1 = sand.u32 1, %s1227_s15   ;;  %p1006_p2 = pnand %p918_p13, %p1336_p9 }
 0x10e   : > { %s803_s24 = scalar_lea.sflag [#allocation5], %s802_s1 }
 0x10f   : > { %p1007_p4 = pneg %p1006_p2 }
 0x111   : > { %1222 = dma.done.wait (%p1007_p4), %s803_s24, 4096  }
 0x112   : > { %1224 = vsyncadd (%p1007_p4), %s803_s24, 4294963200  ;;  %s21_s20 = sadd.s32 1, %s1247_s20   ;;  %s1595_s15 = smov %s1231_s16 }
 0x113   : > { %p18_p6 = scmp.ge.s32.totalorder %s21_s20, 4   ;;  %s1596_s16 = smov %s1235_s17 }
 0x114   : > { %s1597_s17 = smov %s1379_s3  ;;  %s1598_s18 = smov %s1243_s19 }
 0x115   : > { %s1599_s19 = smov %s1601_s30  ;;  %20 = sbr.rel (!%p18_p6) target bundleno = 10 (0xa), region = 102 }
 0x11a   :  { %809 = vsyncpa [#allocation4], 1 }
 0x11b   :  { %811 = vsyncpa [#allocation4 + $0x1], 1 }
 0x11c   :  { %812 = vsyncpa [#allocation7], 1 }
 0x11d   :  { %813 = vsyncpa [#allocation5], 1 }
 0x11e   :  { %815 = vsyncpa [#allocation5 + $0x1], 1 }

</bundles_post_ra>
